<compile_context>
chip_gen: v5e
topology: v5e:2x2
jax: 0.10.0
libtpu: 0.0.40
codegen_flags: <defaults>
</compile_context>

<pallas_src>
import math

import jax
import jax.numpy as jnp
from jax import lax
from jax.experimental import pallas as pl
from jax.experimental.pallas import tpu as pltpu


_EPS = 1e-12  # F.normalize default: x / max(||x||_2, eps)


def _round_up(a, b):
    return ((a + b - 1) // b) * b


def _cdiv(a, b):
    return -(-a // b)


def _cosine_head_kernel(x_ref, p_ref, col_ref, o_ref, acc_ref, rs_ref):
    # x_ref   : VMEM (TM, TK)  bf16   x tile
    # p_ref   : VMEM (TN, TK)  bf16   proto tile (native [out, K] layout)
    # col_ref : VMEM (1, TN)   f32    tau / ||proto_row||  (precomputed)
    # o_ref   : VMEM (TM, TN)  f32    output tile (written at last K step)
    # acc_ref : VMEM (TM, TN)  f32    matmul accumulator scratch
    # rs_ref  : VMEM (TM, 1)   f32    x row sum-of-squares accumulator scratch
    k = pl.program_id(2)

    @pl.when(k == 0)
    def _():
        acc_ref[...] = jnp.zeros_like(acc_ref)
        rs_ref[...] = jnp.zeros_like(rs_ref)

    x = x_ref[...]

    # Partial x row sum-of-squares in f32 (VPU/XLU work, hides under the MXU).
    xf = x.astype(jnp.float32)
    rs_ref[...] += jnp.sum(xf * xf, axis=-1, keepdims=True)

    # bf16 MXU matmul with f32 accumulation; contract the last dims directly
    # so proto is consumed in its native [out, K] layout (no transpose).
    acc_ref[...] += lax.dot_general(
        x, p_ref[...],
        dimension_numbers=(((1,), (1,)), ((), ())),
        preferred_element_type=jnp.float32,
    )

    # Fused epilogue at the last K step: rank-1 scale row_inv * col_scale.
    @pl.when(k == pl.num_programs(2) - 1)
    def _():
        row_inv = lax.rsqrt(jnp.maximum(rs_ref[...], _EPS * _EPS))   # (TM, 1)
        o_ref[...] = acc_ref[...] * row_inv * col_ref[...]


def _vmem_capacity_bytes():
    try:
        info = pltpu.get_tpu_info()
        cap = getattr(info, "vmem_capacity_bytes", None)
        if cap:
            return int(cap)
    except Exception:
        pass
    return 64 * 1024 * 1024   # conservative default (v7x-sized)


def cosine_head(x, proto, tau, *, tk_max=None):
    """x: [N, in_dim], proto: [out_dim, in_dim], tau: scalar -> f32 [N, out_dim]."""
    n, in_dim = x.shape
    out_dim, in_dim_p = proto.shape
    assert in_dim == in_dim_p

    # Proto column scale in f32 (tau folded in); MXU operands go bf16 below.
    p32 = proto.astype(jnp.float32)
    tau_f = jnp.asarray(tau, jnp.float32)
    col_scale = tau_f * lax.rsqrt(
        jnp.maximum(jnp.sum(p32 * p32, axis=-1), _EPS * _EPS))        # (out_dim,)

    # ---- Generation-aware VMEM budget. ----
    vmem_cap = _vmem_capacity_bytes()
    vmem_limit = int(min(vmem_cap * 3 // 4, 100 * 1024 * 1024))
    tile_budget = vmem_limit * 3 // 4

    # Balanced row / output tiles (cuts zero-padding waste vs. always 256).
    tm = min(256, _round_up(_cdiv(n, _cdiv(n, 256)), 8))
    tn = min(256, _round_up(_cdiv(out_dim, _cdiv(out_dim, 256)), 128))

    k_pad = _round_up(in_dim, 128)

    def _vmem_bytes(tm_, tn_, tk_):
        inp = 2 * (tm_ * tk_ + tn_ * tk_) * 2        # double-buffered bf16 inputs
        col = 2 * tn_ * 4                            # streamed col-scale tile
        out = 2 * tm_ * tn_ * 4                      # double-buffered f32 output
        acc = tm_ * tn_ * 4 + tm_ * 128 * 4          # accumulator + row-sumsq scratch
        tmp = tm_ * tk_ * 4 + tm_ * tn_ * 4          # f32 upcast / epilogue temporaries
        return inp + col + out + acc + tmp

    # K tile: as large as comfortably fits (capped; beyond ~2K there is no
    # perf benefit and temporaries grow).  Shrink K first, keep TM/TN large.
    tk = min(k_pad, 2048)
    if tk_max is not None:
        tk = min(tk, max(128, _round_up(tk_max, 128)))
    while _vmem_bytes(tm, tn, tk) > tile_budget and tk > 128:
        tk = max(128, _round_up(tk // 2, 128))
    while _vmem_bytes(tm, tn, tk) > tile_budget and (tm > 8 or tn > 128):
        if tn > 128:
            tn = max(128, _round_up(tn // 2, 128))
        else:
            tm = max(8, _round_up(tm // 2, 8))

    # Balance the K tiles and re-pad K so it divides evenly.
    grid_k = _cdiv(k_pad, tk)
    tk = _round_up(_cdiv(k_pad, grid_k), 128)
    k_pad = tk * grid_k

    n_pad = _round_up(n, tm)
    out_pad = _round_up(out_dim, tn)
    grid_i = n_pad // tm
    grid_j = out_pad // tn

    # ---- Padded operands (bf16 for the MXU, f32 for the rank-1 scale). ----
    x_p = jnp.zeros((n_pad, k_pad), jnp.bfloat16)
    x_p = x_p.at[:n, :in_dim].set(x.astype(jnp.bfloat16))
    p_p = jnp.zeros((out_pad, k_pad), jnp.bfloat16)
    p_p = p_p.at[:out_dim, :in_dim].set(proto.astype(jnp.bfloat16))
    col_p = jnp.zeros((1, out_pad), jnp.float32)
    col_p = col_p.at[0, :out_dim].set(col_scale)

    # ---- Grid nesting: when K fits in one tile, keep resident the operand
    # whose re-streaming would cost more HBM bytes. ----
    x_bytes = n_pad * k_pad * 2
    p_bytes = out_pad * k_pad * 2
    if grid_k == 1:
        rows_outer = (x_bytes + p_bytes * grid_i) < (x_bytes * grid_j + p_bytes)
    else:
        rows_outer = False   # both operands re-stream with K innermost anyway

    if rows_outer:
        grid = (grid_i, grid_j, grid_k)
        x_map = lambda i, j, k: (i, k)
        p_map = lambda i, j, k: (j, k)
        col_map = lambda i, j, k: (0, j)
        out_map = lambda i, j, k: (i, j)
    else:
        grid = (grid_j, grid_i, grid_k)
        x_map = lambda j, i, k: (i, k)
        p_map = lambda j, i, k: (j, k)
        col_map = lambda j, i, k: (0, j)
        out_map = lambda j, i, k: (i, j)

    cost = pl.CostEstimate(
        flops=2 * n_pad * out_pad * k_pad,
        transcendentals=n_pad + out_pad,
        bytes_accessed=x_bytes + p_bytes + out_pad * 4 + n_pad * out_pad * 4,
    )

    out = pl.pallas_call(
        _cosine_head_kernel,
        out_shape=jax.ShapeDtypeStruct((n_pad, out_pad), jnp.float32),
        grid_spec=pltpu.PrefetchScalarGridSpec(
            num_scalar_prefetch=0,
            grid=grid,
            in_specs=[
                pl.BlockSpec((tm, tk), x_map),      # x rows (bf16)
                pl.BlockSpec((tn, tk), p_map),      # proto rows (bf16)
                pl.BlockSpec((1, tn), col_map),     # tau / ||proto_row|| (f32)
            ],
            out_specs=pl.BlockSpec((tm, tn), out_map),
            scratch_shapes=[
                pltpu.VMEM((tm, tn), jnp.float32),  # matmul accumulator
                pltpu.VMEM((tm, 1), jnp.float32),   # x row sum-of-squares
            ],
        ),
        compiler_params=pltpu.CompilerParams(
            dimension_semantics=("parallel", "parallel", "arbitrary"),
            vmem_limit_bytes=vmem_limit,
        ),
        cost_estimate=cost,
    )(x_p, p_p, col_p)

    return out[:n, :out_dim]


def init_cosine_head_params(key, in_dim, out_dim, tau=10.0):
    """Deterministic synthetic params mirroring the PyTorch __init__.

    proto: (out_dim, in_dim), kaiming_uniform_(a=sqrt(5)) ->
           U(-1/sqrt(in_dim), 1/sqrt(in_dim));  tau: scalar (learnable).
    """
    bound = 1.0 / math.sqrt(in_dim)
    proto = jax.random.uniform(
        key, (out_dim, in_dim), dtype=jnp.float32, minval=-bound, maxval=bound
    )
    return proto, jnp.float32(tau)


def _reference(x, proto, tau):
    xn = x / jnp.maximum(jnp.linalg.norm(x, axis=-1, keepdims=True), 1e-12)
    pn = proto / jnp.maximum(jnp.linalg.norm(proto, axis=-1, keepdims=True), 1e-12)
    return (xn @ pn.T) * tau


if __name__ == "__main__":
    key = jax.random.PRNGKey(0)
    keys = jax.random.split(key, 8)

    # bf16 MXU inputs + f32 accumulation: with tau=10 the worst-case absolute
    # error is ~1e-1, so the check tolerance is 2e-1 (was 1e-3 in pure f32).
    TOL = 2e-1

    # Case 1: tiny shapes consistent with the module (hidden=32).
    N, IN_DIM, OUT_DIM = 8, 32, 16
    x = jax.random.normal(keys[0], (N, IN_DIM), dtype=jnp.float32)
    proto, tau = init_cosine_head_params(keys[1], IN_DIM, OUT_DIM, tau=10.0)
    out = jax.block_until_ready(cosine_head(x, proto, tau))
    ref = _reference(x, proto, tau)
    assert out.shape == (N, OUT_DIM)
    assert jnp.max(jnp.abs(out - ref)) < TOL

    # Case 2: unaligned shapes -> padding, balanced TM (152), tn=256 lane path.
    N2, IN2, OUT2 = 300, 96, 200
    x2 = jax.random.normal(keys[2], (N2, IN2), dtype=jnp.float32)
    proto2, tau2 = init_cosine_head_params(keys[3], IN2, OUT2, tau=10.0)
    out2 = jax.block_until_ready(cosine_head(x2, proto2, tau2))
    ref2 = _reference(x2, proto2, tau2)
    assert out2.shape == (N2, OUT2)
    assert jnp.max(jnp.abs(out2 - ref2)) < TOL

    # Case 3: forced K-tiling (tk_max=128 -> grid_k=3) + multiple out tiles,
    # exercising the accumulator reset / epilogue path.
    N3, IN3, OUT3 = 16, 384, 600
    x3 = jax.random.normal(keys[4], (N3, IN3), dtype=jnp.float32)
    proto3, tau3 = init_cosine_head_params(keys[5], IN3, OUT3, tau=10.0)
    out3 = jax.block_until_ready(cosine_head(x3, proto3, tau3, tk_max=128))
    ref3 = _reference(x3, proto3, tau3)
    assert out3.shape == (N3, OUT3)
    assert jnp.max(jnp.abs(out3 - ref3)) < TOL

    # Case 4: many out tiles, few row tiles, single K tile -> exercises the
    # rows-outer grid nesting (x resident, proto streamed).
    N4, IN4, OUT4 = 16, 64, 600
    x4 = jax.random.normal(keys[6], (N4, IN4), dtype=jnp.float32)
    proto4, tau4 = init_cosine_head_params(keys[7], IN4, OUT4, tau=10.0)
    out4 = jax.block_until_ready(cosine_head(x4, proto4, tau4))
    ref4 = _reference(x4, proto4, tau4)
    assert out4.shape == (N4, OUT4)
    assert jnp.max(jnp.abs(out4 - ref4)) < TOL

    print("KERNEL_OK")
</pallas_src>

<mosaic_0001>
module attributes {stable_mosaic.version = 11 : i64} {
  func.func @_cosine_head_kernel(%arg0: i32, %arg1: i32, %arg2: i32, %arg3: memref<8x128xbf16, #tpu.memory_space<vmem>>, %arg4: memref<128x128xbf16, #tpu.memory_space<vmem>>, %arg5: memref<1x128xf32, #tpu.memory_space<vmem>>, %arg6: memref<8x128xf32, #tpu.memory_space<vmem>>, %arg7: memref<8x128xf32, #tpu.memory_space<vmem>>, %arg8: memref<8x1xf32, #tpu.memory_space<vmem>>) attributes {dimension_semantics = [#tpu.dimension_semantics<parallel>, #tpu.dimension_semantics<parallel>, #tpu.dimension_semantics<arbitrary>], iteration_bounds = array<i64: 1, 1, 1>, scalar_prefetch = 0 : i64, scratch_operands = 2 : i64, tpu.core_type = #tpu.core_type<tc>, window_params = [{transform_indices = @transform_0, window_bounds = array<i64: 8, 128>}, {transform_indices = @transform_1, window_bounds = array<i64: 128, 128>}, {transform_indices = @transform_2, window_bounds = array<i64: 1, 128>}, {transform_indices = @transform_3, window_bounds = array<i64: 8, 128>}]} {
    %c0_i32 = arith.constant 0 : i32
    %0 = arith.cmpi eq, %arg2, %c0_i32 : i32
    %1 = arith.extui %0 : i1 to i32
    %c0_i32_0 = arith.constant 0 : i32
    %2 = arith.cmpi ne, %1, %c0_i32_0 : i32
    scf.if %2 {
      %cst_15 = arith.constant 0.000000e+00 : f32
      %19 = vector.broadcast %cst_15 : f32 to vector<8x128xf32>
      %c0_16 = arith.constant 0 : index
      %c0_17 = arith.constant 0 : index
      %20 = vector.load %arg7[%c0_16, %c0_17] : memref<8x128xf32, #tpu.memory_space<vmem>>, vector<8x128xf32>
      tpu.vector_store %arg7[%c0_16, %c0_17], %19 {strides = array<i32>} : memref<8x128xf32, #tpu.memory_space<vmem>>, vector<8x128xf32>,
      %cst_18 = arith.constant 0.000000e+00 : f32
      %21 = vector.broadcast %cst_18 : f32 to vector<8x1xf32>
      %c0_19 = arith.constant 0 : index
      %c0_20 = arith.constant 0 : index
      %22 = vector.load %arg8[%c0_19, %c0_20] : memref<8x1xf32, #tpu.memory_space<vmem>>, vector<8x1xf32>
      tpu.vector_store %arg8[%c0_19, %c0_20], %21 {strides = array<i32>} : memref<8x1xf32, #tpu.memory_space<vmem>>, vector<8x1xf32>,
    } else {
    }
    %c0 = arith.constant 0 : index
    %c0_1 = arith.constant 0 : index
    %3 = vector.load %arg3[%c0, %c0_1] : memref<8x128xbf16, #tpu.memory_space<vmem>>, vector<8x128xbf16>
    %4 = arith.extf %3 : vector<8x128xbf16> to vector<8x128xf32>
    %c0_2 = arith.constant 0 : index
    %c0_3 = arith.constant 0 : index
    %5 = vector.load %arg8[%c0_2, %c0_3] : memref<8x1xf32, #tpu.memory_space<vmem>>, vector<8x1xf32>
    %6 = arith.mulf %4, %4 : vector<8x128xf32>
    %cst = arith.constant dense<0.000000e+00> : vector<8xf32>
    %7 = vector.multi_reduction <add>, %6, %cst [1] : vector<8x128xf32> to vector<8xf32>
    %8 = vector.shape_cast %7 : vector<8xf32> to vector<8x1xf32>
    %9 = arith.addf %5, %8 : vector<8x1xf32>
    %c0_4 = arith.constant 0 : index
    %c0_5 = arith.constant 0 : index
    %10 = vector.load %arg8[%c0_4, %c0_5] : memref<8x1xf32, #tpu.memory_space<vmem>>, vector<8x1xf32>
    tpu.vector_store %arg8[%c0_4, %c0_5], %9 {strides = array<i32>} : memref<8x1xf32, #tpu.memory_space<vmem>>, vector<8x1xf32>,
    %c0_6 = arith.constant 0 : index
    %c0_7 = arith.constant 0 : index
    %11 = vector.load %arg7[%c0_6, %c0_7] : memref<8x128xf32, #tpu.memory_space<vmem>>, vector<8x128xf32>
    %c0_8 = arith.constant 0 : index
    %c0_9 = arith.constant 0 : index
    %12 = vector.load %arg4[%c0_8, %c0_9] : memref<128x128xbf16, #tpu.memory_space<vmem>>, vector<128x128xbf16>
    %cst_10 = arith.constant dense<0.000000e+00> : vector<8x128xf32>
    %13 = tpu.matmul %3, %12, %cst_10 {dimension_numbers = #tpu.dot_dimension_numbers<[1], [1], [0], [0], [0, 0, 1, 0], [], []>} : vector<8x128xbf16>, vector<128x128xbf16>, vector<8x128xf32> -> vector<8x128xf32>
    %14 = arith.addf %11, %13 : vector<8x128xf32>
    %c0_11 = arith.constant 0 : index
    %c0_12 = arith.constant 0 : index
    %15 = vector.load %arg7[%c0_11, %c0_12] : memref<8x128xf32, #tpu.memory_space<vmem>>, vector<8x128xf32>
    tpu.vector_store %arg7[%c0_11, %c0_12], %14 {strides = array<i32>} : memref<8x128xf32, #tpu.memory_space<vmem>>, vector<8x128xf32>,
    %c0_i32_13 = arith.constant 0 : i32
    %16 = arith.cmpi eq, %arg2, %c0_i32_13 : i32
    %17 = arith.extui %16 : i1 to i32
    %c0_i32_14 = arith.constant 0 : i32
    %18 = arith.cmpi ne, %17, %c0_i32_14 : i32
    scf.if %18 {
      %c0_15 = arith.constant 0 : index
      %c0_16 = arith.constant 0 : index
      %19 = vector.load %arg8[%c0_15, %c0_16] : memref<8x1xf32, #tpu.memory_space<vmem>>, vector<8x1xf32>
      %cst_17 = arith.constant 1.000000e-24 : f32
      %20 = vector.broadcast %cst_17 : f32 to vector<8x1xf32>
      %21 = arith.maximumf %19, %20 : vector<8x1xf32>
      %22 = math.rsqrt %21 : vector<8x1xf32>
      %c0_18 = arith.constant 0 : index
      %c0_19 = arith.constant 0 : index
      %23 = vector.load %arg7[%c0_18, %c0_19] : memref<8x128xf32, #tpu.memory_space<vmem>>, vector<8x128xf32>
      %24 = vector.broadcast %22 : vector<8x1xf32> to vector<8x128xf32>
      %25 = arith.mulf %23, %24 : vector<8x128xf32>
      %c0_20 = arith.constant 0 : index
      %c0_21 = arith.constant 0 : index
      %26 = vector.load %arg5[%c0_20, %c0_21] : memref<1x128xf32, #tpu.memory_space<vmem>>, vector<1x128xf32>
      %27 = vector.broadcast %26 : vector<1x128xf32> to vector<8x128xf32>
      %28 = arith.mulf %25, %27 : vector<8x128xf32>
      %c0_22 = arith.constant 0 : index
      %c0_23 = arith.constant 0 : index
      %29 = vector.load %arg6[%c0_22, %c0_23] : memref<8x128xf32, #tpu.memory_space<vmem>>, vector<8x128xf32>
      tpu.vector_store %arg6[%c0_22, %c0_23], %28 {strides = array<i32>} : memref<8x128xf32, #tpu.memory_space<vmem>>, vector<8x128xf32>,
    } else {
    }
    return
  }
  func.func @transform_0(%arg0: i32, %arg1: i32, %arg2: i32) -> (i32, i32) {
    %c0_i32 = arith.constant 0 : i32
    return %arg1, %arg2 : i32, i32
  }
  func.func @transform_1(%arg0: i32, %arg1: i32, %arg2: i32) -> (i32, i32) {
    %c0_i32 = arith.constant 0 : i32
    return %arg0, %arg2 : i32, i32
  }
  func.func @transform_2(%arg0: i32, %arg1: i32, %arg2: i32) -> (i32, i32) {
    %c0_i32 = arith.constant 0 : i32
    %c0_i32_0 = arith.constant 0 : i32
    return %c0_i32, %arg0 : i32, i32
  }
  func.func @transform_3(%arg0: i32, %arg1: i32, %arg2: i32) -> (i32, i32) {
    %c0_i32 = arith.constant 0 : i32
    return %arg1, %arg0 : i32, i32
  }
}

</mosaic_0001>

<bundles_post_ra>
// kernel: tpu_custom_call.1
= control target key start
LH: loop header
LB: loop body
LE: loop exit
PB: predicated region body
PF: predicated region fallthrough
CT: control target
= control target key end

     0   :  { %8 = vsyncpa [#allocation5], 0  ;;  %s357_s0 = inlined_call_operand.hbm [shape: bf16[8,128], index: 0, kind: input, shape index: {}]   ;;  %s358_s1 = inlined_call_operand.hbm [shape: bf16[128,128], index: 1, kind: input, shape index: {}]   ;;  %s359_s2 = inlined_call_operand.vmem [shape: f32[1,128], index: 2, kind: input, shape index: {}]   ;;  %s360_s3 = inlined_call_operand.hbm [shape: f32[8,128], index: 3, kind: output, shape index: {}]  }
   0x1   :  { %9 = vsyncpa [#allocation8], 0 }
   0x2   :  { %10 = vsyncpa [#allocation6], 0  ;;  %s16_s14 = sshll.u32 %s357_s0, 4  ;;  %s316_s15 = smov [#allocation4]   ;;  %s17_s14 = int_to_ptr.hbm [resolvable:$true] %s16_s14 }
   0x3   :  { %s18_s16 = sshll.u32 %s316_s15, 4  ;;  %s26_s19 = sshll.u32 %s358_s1, 4  ;;  %s19_s16 = int_to_ptr.vmem [resolvable:$true] %s18_s16  ;;  %s27_s19 = int_to_ptr.hbm [resolvable:$true] %s26_s19 }
   0x4   :  { %21 = dma.hbm_to_vmem [thread:$0]  %s17_s14, 64, %s19_s16, [#allocation5]  }
   0x5   :  { %s317_s20 = smov [#allocation7]   ;;  %s318_s22 = smov 64  }
   0x6   :  { %s28_s21 = sshll.u32 %s317_s20, 4  ;;  %s319_s23 = smov 4   ;;  %s29_s21 = int_to_ptr.vmem [resolvable:$true] %s28_s21 }
   0x7   :  { %34 = dma.hbm_to_vmem [thread:$0]  %s27_s19, 1024, %s29_s21, [#allocation8], %s318_s22, %s318_s22, %s319_s23  }
   0x8   :  { %310 = dma.done.wait [#allocation5], 64  }
   0x9   :  { %311 = vsyncadd [#allocation5], 4294967232 }
   0xa   :  { %312 = dma.done.wait [#allocation8], 1024  }
   0xb   :  { %313 = vsyncadd [#allocation8], 4294966272  ;;  %v52_v0 = vld [vmem:[#allocation4] sm:$0xf]  ;;  %v225_v4 = vld [vmem:[#allocation7 + $0x30] sm:$0xff]  ;;  %vm50_vm0 = vcmask 7168  }
   0xc   :  { %v226_v1 = vld [vmem:[#allocation7 + $0x38] sm:$0xff]  ;;  %v53_v2 = vunpack.c.l.bf16 %v52_v0  ;;  %v224_v5 = vld [vmem:[#allocation7 + $0x28] sm:$0xff]  ;;  %v320_v6 = vmov 0.0   ;;  %v223_v7 = vld [vmem:[#allocation7 + $0x20] sm:$0xff]  ;;  %v321_v12 = vmov 0   ;;  %s322_s24 = smov [#allocation9]  }
   0xd   :  { %126 = vmatpush.bf16.xpose.msra.mxu0 %v226_v1  ;;  %51 = vst.msk [vmem:[#allocation3] sm:$0xff] %vm50_vm0, %v320_v6  ;;  %v222_v8 = vld [vmem:[#allocation7 + $0x18] sm:$0xff]  ;;  %v221_v9 = vld [vmem:[#allocation7 + $0x10] sm:$0xff]  ;;  %v220_v10 = vld [vmem:[#allocation7 + $0x8] sm:$0xff]  ;;  %234 = vset.pattern.permute.xlu0 %v321_v12  ;;  %s174_s25 = sshll.u32 %s322_s24, 4  ;;  %s176_s28 = sshll.u32 %s360_s3, 4  ;;  %s175_s25 = int_to_ptr.vmem [resolvable:$true] %s174_s25  ;;  %s177_s28 = int_to_ptr.hbm [resolvable:$true] %s176_s28 }
   0xe   :  { %v55_v3 = vmul.f32 %v53_v2, %v53_v2  ;;  %v219_v11 = vld [vmem:[#allocation7] sm:$0xff]  ;;  %v235_v27 = vld [vmem:[%s359_s2] ss:$0 sm:$0xff] }
  0x10   :  { %56 = vadd.xlane.f32.xlu0 %v55_v3 }
  0x14   :  { %v54_v13 = vld [vmem:[#allocation3] sm:$0xff] }
  0x15   :  { %127 = vmatpush.bf16.xpose.msra.mxu0 %v225_v4 }
  0x1d   :  { %128 = vmatpush.bf16.xpose.msra.mxu0 %v224_v5 }
  0x25   :  { %129 = vmatpush.bf16.xpose.msra.mxu0 %v223_v7 }
  0x2d   :  { %130 = vmatpush.bf16.xpose.msra.mxu0 %v222_v8 }
  0x35   :  { %131 = vmatpush.bf16.xpose.msra.mxu0 %v221_v9 }
  0x3d   :  { %132 = vmatpush.bf16.xpose.msra.mxu0 %v220_v10 }
  0x45   :  { %133 = vmatpush.bf16.xpose.msra.mxu0 %v219_v11 }
  0x4c   :  { %134 = vmatmul.bf16.vlgmr.msra.gmra.mxu0 %v52_v0 }
  0x83   :  { %v57_v14 = vpop.xlane.xlu0 %56 }
  0x84   :  { %v58_v15 = vadd.f32 %v57_v14, %v54_v13 }
  0x86   :  { %60 = vst.msk [vmem:[#allocation3] sm:$0xff] %vm50_vm0, %v58_v15 }
  0x8d   :  { %v144_v16 = vld [vmem:[#allocation3] sm:$0xff] }
  0x8e   :  { %v145_v17 = vmax.f32 %v144_v16, 1e-24 }
  0x90   :  { %236 = vrsqrt.f32 %v145_v17  ;;  %vm152_vm2 = vweird.f32 %v145_v17 }
  0x96   :  { %v237_v18 = vpop.eup %236 }
  0x97   :  { %v147_v19 = vmul.f32 %v237_v18, %v145_v17  ;;  %vm153_vm1 = vweird.f32 %v237_v18 }
  0x98   :  { %vm154_vm3 = vmor %vm152_vm2, %vm153_vm1 }
  0x99   :  { %v148_v20 = vmul.f32 %v237_v18, %v147_v19 }
  0x9b   :  { %v149_v21 = vmul.f32 0.5, %v148_v20 }
  0x9d   :  { %v150_v22 = vsub.f32 1.5, %v149_v21 }
  0x9f   :  { %v151_v23 = vmul.f32 %v237_v18, %v150_v22 }
  0xa1   :  { %v155_v24 = vsel %vm154_vm3, %v237_v18, %v151_v23 }
  0xa2   :  { %159 = vperm.xlu0 %234, %v155_v24  }
  0xc9   :  { %v135_v25 = vpop.f32.mrf.mxu0 }
  0xd1   :  { %v137_v26 = vpop.f32.mrf.mxu0 }
 0x114   :  { %v160_v28 = vpop.permute.xlu0 %159 }
 0x115   :  { %v162_v29 = vmul.f32 %v160_v28, %v135_v25 }
 0x117   :  { %v167_v30 = vmul.f32 %v235_v27, %v162_v29 }
 0x119   :  { %168 = vst [vmem:[#allocation9] sm:$0xff] %v167_v30 }
 0x11a   :  { %179 = dma.vmem_to_hbm [thread:$0]  %s175_s25, 128, %s177_s28, [#allocation6]  }
 0x11b   :  { %314 = dma.done.wait [#allocation6], 128  }
 0x11c   :  { %315 = vsyncadd [#allocation6], 4294967168 }
 0x11d   :  { %184 = vsyncpa [#allocation5], 1 }
 0x11e   :  { %185 = vsyncpa [#allocation8], 1 }
 0x11f   :  { %186 = vsyncpa [#allocation6], 1 }

</bundles_post_ra>
